<compile_context>
chip_gen: v6e
topology: v6e:2x2x1
jax: 0.10.0
libtpu: 0.0.40
codegen_flags: <defaults>
</compile_context>

<pallas_src>
import functools

import jax
import jax.numpy as jnp
from jax.experimental import pallas as pl
from jax.experimental.pallas import tpu as pltpu

_LANES = 128
_TARGET_BLOCK_BYTES = 2 * 1024 * 1024  # ~2 MiB per block: safe on v5e, good on v6e/v7x.


def _mc_dropout_kernel(seed_ref, x_ref, o_ref, *, block_rows, threshold32, scale):
    # seed_ref: (1,) int32 in SMEM (scalar prefetch)
    # x_ref:    (block_rows, 128) input tile in VMEM
    # o_ref:    (block_rows, 128) output tile in VMEM
    seed = seed_ref[0].astype(jnp.uint32)

    # Global element index of every lane in this block (counter for the hash).
    shape = x_ref.shape
    row0 = (pl.program_id(0) * block_rows)
    row_iota = jax.lax.broadcasted_iota(jnp.int32, shape, 0).astype(jnp.uint32)
    lane_iota = jax.lax.broadcasted_iota(jnp.int32, shape, 1).astype(jnp.uint32)
    idx = (jnp.uint32(row0) + row_iota) * jnp.uint32(_LANES) + lane_iota

    # Counter-based PRNG: murmur3 fmix32 of (idx ^ seed * golden-ratio).
    h = idx ^ (seed * jnp.uint32(0x9E3779B9))
    h = (h ^ (h >> jnp.uint32(16))) * jnp.uint32(0x85EBCA6B)
    h = (h ^ (h >> jnp.uint32(13))) * jnp.uint32(0xC2B2AE35)
    h = h ^ (h >> jnp.uint32(16))

    # keep with probability threshold32 / 2^32  (== 1 - p up to <2^-32 quantization)
    keep = h < jnp.uint32(threshold32)

    xv = x_ref[...]
    scale_c = jnp.asarray(scale, dtype=xv.dtype)
    o_ref[...] = jnp.where(keep, xv * scale_c, jnp.zeros_like(xv))


def mc_dropout(x, p=0.5, *, training=False, force_dropout=False, seed=0):
    """MC dropout forward. Matches F.dropout(x, p, training=training or force_dropout)."""
    if not (training or force_dropout) or p == 0.0:
        return x  # identity fast path, no kernel launch
    if p >= 1.0:
        return jnp.zeros_like(x)

    keep_prob = 1.0 - float(p)
    threshold32 = min(int(round(keep_prob * (1 << 32))), (1 << 32) - 1)
    scale = 1.0 / keep_prob

    itemsize = jnp.dtype(x.dtype).itemsize
    sublane = 8 * max(1, 4 // itemsize)  # 8 (4B), 16 (2B), 32 (1B)

    # Lane-dense (rows, 128) slab; only pad the flat tail when size % 128 != 0.
    total = x.size
    rows = -(-total // _LANES)
    pad = rows * _LANES - total

    x_flat = x.reshape(-1)
    if pad:
        x_flat = jnp.pad(x_flat, (0, pad))
    x2d = x_flat.reshape(rows, _LANES)

    # Block size: ~2 MiB, rounded to the dtype sublane tile; keep >= 2 grid
    # steps when possible so v7x's two TensorCores both get work. The last
    # block may be partial -- Pallas clips it, no wrapper-side row padding.
    max_block_rows = max(sublane,
                         (_TARGET_BLOCK_BYTES // (_LANES * itemsize)) // sublane * sublane)
    half_rows = -(-(-(-rows // 2)) // sublane) * sublane
    block_rows = min(max_block_rows, max(sublane, half_rows))
    grid = pl.cdiv(rows, block_rows)

    seed_arr = jnp.asarray([seed], dtype=jnp.int32)

    kernel = functools.partial(
        _mc_dropout_kernel,
        block_rows=block_rows,
        threshold32=threshold32,
        scale=scale,
    )

    out2d = pl.pallas_call(
        kernel,
        out_shape=jax.ShapeDtypeStruct((rows, _LANES), x.dtype),
        grid_spec=pltpu.PrefetchScalarGridSpec(
            num_scalar_prefetch=1,  # seed -> SMEM, passed positionally to index_maps
            grid=(grid,),
            in_specs=[
                pl.BlockSpec((block_rows, _LANES), lambda i, seed: (i, 0)),
            ],
            out_specs=pl.BlockSpec((block_rows, _LANES), lambda i, seed: (i, 0)),
        ),
        compiler_params=pltpu.CompilerParams(
            dimension_semantics=("parallel",),  # v7x: split blocks across both TCs
        ),
        cost_estimate=pl.CostEstimate(
            flops=total,
            transcendentals=0,
            bytes_accessed=2 * total * itemsize,
        ),
    )(seed_arr, x2d)

    if pad:
        return out2d.reshape(-1)[:total].reshape(x.shape)
    return out2d.reshape(x.shape)


if __name__ == "__main__":
    key = jax.random.PRNGKey(0)
    N, C, H, W = 2, 4, 16, 16
    x = jax.random.normal(key, (N, C, H, W), dtype=jnp.float32)
    p = 0.5

    # Inactive dropout (training=False, force_dropout=False): identity.
    out_eval = mc_dropout(x, p=p, training=False, force_dropout=False, seed=0)
    out_eval = jax.block_until_ready(out_eval)
    assert jnp.array_equal(out_eval, x), "eval-mode dropout must be identity"

    # MC dropout active (force_dropout=True): run the Pallas kernel.
    out = mc_dropout(x, p=p, training=False, force_dropout=True, seed=0)
    out = jax.block_until_ready(out)
    assert out.shape == x.shape, out.shape

    # Every element is either dropped (0) or scaled by 1/(1-p).
    scale = 1.0 / (1.0 - p)
    dropped = out == 0.0
    kept_ok = jnp.abs(out - scale * x) < 1e-5
    assert bool(jnp.all(dropped | kept_ok)), "elements must be 0 or x/(1-p)"

    # Drop fraction statistically consistent with p (2048 elems -> tight bound).
    frac = float(jnp.mean(dropped.astype(jnp.float32)))
    assert 0.35 < frac < 0.65, f"drop fraction {frac} inconsistent with p={p}"

    # Different seeds produce different masks.
    out2 = jax.block_until_ready(mc_dropout(x, p=p, force_dropout=True, seed=1))
    assert not jnp.array_equal(out, out2), "different seeds must give different masks"

    print("KERNEL_OK")
</pallas_src>

<mosaic_0001>
module attributes {stable_mosaic.version = 11 : i64} {
  func.func @_mc_dropout_kernel(%arg0: i32, %arg1: memref<1xi32, #tpu.memory_space<smem>>, %arg2: memref<8x128xf32, #tpu.memory_space<vmem>>, %arg3: memref<8x128xf32, #tpu.memory_space<vmem>>) attributes {dimension_semantics = [#tpu.dimension_semantics<parallel>], iteration_bounds = array<i64: 2>, scalar_prefetch = 1 : i64, scratch_operands = 0 : i64, tpu.core_type = #tpu.core_type<tc>, window_params = [{transform_indices = @transform_0, window_bounds = array<i64: 8, 128>}, {transform_indices = @transform_1, window_bounds = array<i64: 8, 128>}]} {
    %c0 = arith.constant 0 : index
    %0 = memref.load %arg1[%c0] : memref<1xi32, #tpu.memory_space<smem>>
    %c8_i32 = arith.constant 8 : i32
    %1 = arith.muli %arg0, %c8_i32 : i32
    %2 = tpu.iota {dimensions = array<i32: 0>} : vector<8x128xi32>
    %3 = tpu.iota {dimensions = array<i32: 1>} : vector<8x128xi32>
    %4 = vector.broadcast %1 : i32 to vector<8x128xi32>
    %5 = arith.addi %4, %2 : vector<8x128xi32>
    %c128_i32 = arith.constant 128 : i32
    %6 = vector.broadcast %c128_i32 : i32 to vector<8x128xi32>
    %7 = arith.muli %5, %6 : vector<8x128xi32>
    %8 = arith.addi %7, %3 : vector<8x128xi32>
    %c-1640531527_i32 = arith.constant -1640531527 : i32
    %9 = arith.muli %0, %c-1640531527_i32 : i32
    %10 = vector.broadcast %9 : i32 to vector<8x128xi32>
    %11 = arith.xori %8, %10 : vector<8x128xi32>
    %c16_i32 = arith.constant 16 : i32
    %12 = vector.broadcast %c16_i32 : i32 to vector<8x128xi32>
    %13 = arith.shrui %11, %12 : vector<8x128xi32>
    %14 = arith.xori %11, %13 : vector<8x128xi32>
    %c-2048144789_i32 = arith.constant -2048144789 : i32
    %15 = vector.broadcast %c-2048144789_i32 : i32 to vector<8x128xi32>
    %16 = arith.muli %14, %15 : vector<8x128xi32>
    %c13_i32 = arith.constant 13 : i32
    %17 = vector.broadcast %c13_i32 : i32 to vector<8x128xi32>
    %18 = arith.shrui %16, %17 : vector<8x128xi32>
    %19 = arith.xori %16, %18 : vector<8x128xi32>
    %c-1028477387_i32 = arith.constant -1028477387 : i32
    %20 = vector.broadcast %c-1028477387_i32 : i32 to vector<8x128xi32>
    %21 = arith.muli %19, %20 : vector<8x128xi32>
    %c16_i32_0 = arith.constant 16 : i32
    %22 = vector.broadcast %c16_i32_0 : i32 to vector<8x128xi32>
    %23 = arith.shrui %21, %22 : vector<8x128xi32>
    %24 = arith.xori %21, %23 : vector<8x128xi32>
    %c-2147483648_i32 = arith.constant -2147483648 : i32
    %25 = vector.broadcast %c-2147483648_i32 : i32 to vector<8x128xi32>
    %26 = arith.cmpi ult, %24, %25 : vector<8x128xi32>
    %c0_1 = arith.constant 0 : index
    %c0_2 = arith.constant 0 : index
    %27 = vector.load %arg2[%c0_1, %c0_2] : memref<8x128xf32, #tpu.memory_space<vmem>>, vector<8x128xf32>
    %cst = arith.constant 2.000000e+00 : f32
    %28 = vector.broadcast %cst : f32 to vector<8x128xf32>
    %29 = arith.mulf %27, %28 : vector<8x128xf32>
    %cst_3 = arith.constant 0.000000e+00 : f32
    %30 = vector.broadcast %cst_3 : f32 to vector<8x128xf32>
    %31 = arith.select %26, %29, %30 : vector<8x128xi1>, vector<8x128xf32>
    %c0_4 = arith.constant 0 : index
    %c0_5 = arith.constant 0 : index
    %32 = vector.load %arg3[%c0_4, %c0_5] : memref<8x128xf32, #tpu.memory_space<vmem>>, vector<8x128xf32>
    tpu.vector_store %arg3[%c0_4, %c0_5], %31 {strides = array<i32>} : memref<8x128xf32, #tpu.memory_space<vmem>>, vector<8x128xf32>,
    return
  }
  func.func @transform_0(%arg0: i32, %arg1: memref<1xi32, #tpu.memory_space<smem>>) -> (i32, i32) {
    %c0_i32 = arith.constant 0 : i32
    %c0_i32_0 = arith.constant 0 : i32
    return %arg0, %c0_i32 : i32, i32
  }
  func.func @transform_1(%arg0: i32, %arg1: memref<1xi32, #tpu.memory_space<smem>>) -> (i32, i32) {
    %c0_i32 = arith.constant 0 : i32
    %c0_i32_0 = arith.constant 0 : i32
    return %arg0, %c0_i32 : i32, i32
  }
}

</mosaic_0001>

<bundles_post_ra>
// kernel: tpu_custom_call.1
= control target key start
LH: loop header
LB: loop body
LE: loop exit
PB: predicated region body
PF: predicated region fallthrough
CT: control target
= control target key end

     0   :  { %s565_s0 = inlined_call_operand.<no memory space> [shape: s32[1], index: 0, kind: input, shape index: {}]   ;;  %s566_s1 = inlined_call_operand.hbm [shape: f32[16,128], index: 1, kind: input, shape index: {}]   ;;  %s567_s2 = inlined_call_operand.hbm [shape: f32[16,128], index: 2, kind: output, shape index: {}]  }
   0x1   :  { %7 = sst [smem:[#allocation3]] %s565_s0 }
   0x2   :  { %8 = vsyncpa [#allocation5], 0 }
   0x3   :  { %10 = vsyncpa [#allocation5 + $0x1], 0 }
   0x4   :  { %11 = vsyncpa [#allocation6], 0 }
   0x5   :  { %13 = vsyncpa [#allocation6 + $0x1], 0  ;;  %s417_s11 = smov 0   ;;  %s419_s12 = smov 0  }
   0x6   :  { %s421_s13 = smov 0   ;;  %s423_s14 = smov 0  }
   0x7 LB: > { %s438_s0 = sadd.s32 4294967295, %s395_s14   ;;  %s244_s15 = sadd.s32 4294967294, %s395_s14   ;;  %s395_s14 = sphi %s423_s14, %s584_s14   ;;  %s391_s13 = sphi %s421_s13, %s583_s13   ;;  %s387_s12 = sphi %s419_s12, %s582_s12   ;;  %s383_s11 = sphi %s417_s11, %s581_s11  }
   0x8   : > { %s442_s16 = sadd.s32 1, %s395_s14   ;;  %s26_s17 = sadd.s32 1, %s391_s13 }
   0x9   : > { %s23_s18 = ssub.s32 %s395_s14, %s442_s16  ;;  %p33_p0 = scmp.ne.s32.totalorder %s391_s13, %s387_s12 }
   0xa   : > { %p24_p1 = scmp.eq.s32.totalorder %s23_s18, 0  ;;  %p34_p2 = scmp.eq.s32.totalorder %s395_s14, 0 }
   0xb   : > { %p39_p3 = scmp.ne.s32.totalorder %s387_s12, %s383_s11  ;;  %p40_p4 = scmp.eq.s32.totalorder %s438_s0, 0 }
   0xc   : > { %s454_s19 = scalar_select %p24_p1, %s391_s13, %s26_s17  }
   0xd   : > { %p456_p5 = por %p34_p2, %p33_p0  ;;  %p460_p6 = por %p40_p4, %p39_p3 }
   0xe   : > { %p63_p7 = scmp.eq.s32.totalorder %s438_s0, 1  ;;  %p69_p8 = scmp.eq.s32.totalorder %s244_s15, 1 }
   0xf   : > { %s571_s21 = scalar_select %p460_p6, 1, 0 }
  0x10   : > { %p269_p10 = scmp.lt.s32.totalorder %s395_s14, 2  ;;  %p467_p11 = por %p63_p7, %p33_p0 }
  0x11   : > { %p471_p12 = por %p69_p8, %p39_p3  ;;  %s89_s24 = sand.u32 1, %s391_s13  }
  0x12   : > { %s572_s22 = scalar_select %p467_p11, 1, 0 }
  0x13   : > { %s573_s23 = scalar_select %p471_p12, 1, 0 }
  0x14   : > { %s248_s25 = sshll.u32 %s395_s14, 7  ;;  %s247_s26 = sshll.u32 %s89_s24, 3 }
  0x15   : > { %s480_s29 = scalar_lea.hbm %s566_s1, %s248_s25  ;;  %s93_s30 = scalar_lea.vmem [#allocation4], %s247_s26 }
  0x16   : > { %s100_s3 = sshll.u32 %s93_s30, 4  ;;  %p484_p13 = pnand %p269_p10, %p456_p5  ;;  %s488_s3 = int_to_ptr.vmem [resolvable:$true] %s100_s3 }
  0x17   : > { %s90_s5 = scalar_lea.sflag [#allocation5], %s89_s24  ;;  %s303_s6 = scalar_lea.hbm %s480_s29, 128 }
  0x18   : > { %p304_p2 = scmp.ne.s32.totalorder %s480_s29, %s303_s6  ;;  %p305_p3 = pneg %p484_p13 }
  0x19   : > { %s308_s9 = scalar_lea.hbm %s566_s1, 256  ;;  %p309_p5 = scmp.lt.s32.totalorder %s480_s29, %s566_s1 }
  0x1a   : > { %p306_p4 = pnand %p305_p3, %p304_p2  ;;  %p310_p8 = scmp.lt.s32.totalorder %s308_s9, %s303_s6 }
  0x1c   : > { %p307_p7 = pneg %p306_p4  ;;  %p311_p10 = por %p310_p8, %p309_p5 }
  0x1e   : > { %p312_p9 = pnand %p311_p10, %p307_p7 }
  0x20   : > { %315 = shalt.err (!%p312_p9)
}
  0x21   : > { %s316_s17 = scalar_lea.vmem %s488_s3, 128  ;;  %s397_s18 = smov [#allocation4]  }
  0x22   : > { %p317_p0 = scmp.ne.s32.totalorder %s488_s3, %s316_s17  ;;  %s321_s20 = sshll.u32 %s397_s18, 4  ;;  %s322_s20 = int_to_ptr.vmem [resolvable:$false] %s321_s20 }
  0x23   : > { %s323_s24 = scalar_lea.vmem %s322_s20, 256  ;;  %p324_p4 = scmp.lt.s32.totalorder %s488_s3, %s322_s20 }
  0x24   : > { %p319_p1 = pnand %p317_p0, %p305_p3  ;;  %p325_p12 = scmp.lt.s32.totalorder %s323_s24, %s316_s17 }
  0x26   : > { %p320_p2 = pneg %p319_p1  ;;  %p326_p11 = por %p325_p12, %p324_p4 }
  0x28   : > { %p327_p6 = pnand %p326_p11, %p320_p2 }
  0x2a   : > { %330 = shalt.err (!%p327_p6)
}
  0x2b   : > { %264 = dma.hbm_to_vmem [thread:$0]  (!%p484_p13), %s480_s29, 128, %s488_s3, %s90_s5  }
  0x2c   : > { %p575_p9 = scmp.lt.s32.totalorder %s395_s14, 3  ;;  %p576_p7 = scmp.ge.s32.totalorder %s395_s14, 1 }
  0x2e   : > { %p106_p0 = pnand %p576_p7, %p575_p9 }
  0x2f   : > { %s515_s25 = sand.u32 (!%p106_p0), 1, %s387_s12   ;;  %p577_p6 = scmp.ne.s32.totalorder (!%p106_p0), %s571_s21, 0 }
  0x30   : > { %109 = sbr.rel (%p106_p0) target bundleno = 97 (0x61), region = 24  ;;  %s250_s26 = sshll.u32 (!%p106_p0), %s515_s25, 3 }
  0x31   : > { %s112_s27 = scalar_lea.sflag (!%p106_p0), [#allocation5], %s515_s25  ;;  %s115_s28 = scalar_lea.vmem (!%p106_p0), [#allocation4], %s250_s26 }
  0x35   : > { %374 = dma.done.wait (%p577_p6), %s112_s27, 128  }
  0x36   : > { %376 = vsyncadd (%p577_p6), %s112_s27, 4294967168  ;;  %s252_s29 = sshll.u32 %s438_s0, 3  ;;  %v136_v0 = vlaneseq  ;;  %s134_s30 = sld [smem:[#allocation3]]  ;;  %v156_v15 = vld [vmem:[%s115_s28] sm:$0xff] }
  0x37   : > { %v140_v1 = vstv %s252_s29  ;;  %s133_s21 = scalar_lea.vmem [#allocation7], %s250_s26  ;;  %v157_v17 = vmul.f32 2.0, %v156_v15  ;;  %s254_s5 = sshll.u32 %s438_s0, 7 }
  0x38   : > { %v137_v2 = vshrl.u32 %v136_v0, 7  ;;  %v139_v3 = vand.u32 127, %v136_v0  ;;  %s174_s4 = sshll.u32 %s133_s21, 4  ;;  %s172_s8 = scalar_lea.hbm %s567_s2, %s254_s5  ;;  %s525_s4 = int_to_ptr.vmem [resolvable:$true] %s174_s4 }
  0x39   : > { %s161_s9 = scalar_lea.sflag [#allocation6], %s515_s25  ;;  %s331_s10 = scalar_lea.vmem %s525_s4, 128 }
  0x3a   : > { %v141_v4 = vadd.s32 %v140_v1, %v137_v2  ;;  %p332_p11 = scmp.ne.s32.totalorder %s525_s4, %s331_s10  ;;  %p578_p12 = scmp.ne.s32.totalorder %s572_s22, 0 }
  0x3b   : > { %s398_s0 = smov [#allocation7]  }
  0x3c   : > { %v142_v5 = vmul.u32 128, %v141_v4  ;;  %s144_s3 = smul.u32 2654435769, %s134_s30  ;;  %p333_p13 = pnand %p332_p11, %p578_p12 }
  0x3d   : > { %s335_s15 = sshll.u32 %s398_s0, 4  ;;  %s336_s15 = int_to_ptr.vmem [resolvable:$false] %s335_s15 }
  0x3e   : > { %v143_v6 = vadd.s32 %v142_v5, %v139_v3  ;;  %v145_v7 = vstv %s144_s3  ;;  %p334_p1 = pneg %p333_p13  ;;  %s337_s17 = scalar_lea.vmem %s336_s15, 256 }
  0x3f   : > { %p338_p3 = scmp.lt.s32.totalorder %s525_s4, %s336_s15  ;;  %p339_p5 = scmp.lt.s32.totalorder %s337_s17, %s331_s10 }
  0x40   : > { %v146_v8 = vxor.u32 %v145_v7, %v143_v6 }
  0x41   : > { %p340_p8 = por %p339_p5, %p338_p3 }
  0x42   : > { %v147_v9 = vshrl.u32 %v146_v8, 16 }
  0x43   : > { %p341_p10 = pnand %p340_p8, %p334_p1 }
  0x44   : > { %v148_v10 = vxor.u32 %v147_v9, %v146_v8 }
  0x46   : > { %v149_v11 = vmul.u32 2246822507, %v148_v10 }
  0x48   : > { %v150_v12 = vshrl.u32 %v149_v11, 13 }
  0x4a   : > { %v151_v13 = vxor.u32 %v150_v12, %v149_v11 }
  0x4c   : > { %v152_v14 = vmul.u32 3266489909, %v151_v13 }
  0x4e   : > { %v153_v16 = vshrl.u32 %v152_v14, 16 }
  0x50   : > { %v154_v18 = vxor.u32 %v153_v16, %v152_v14 }
  0x52   : > { %vm155_vm0 = vcmp.lt.u32.totalorder %v154_v18, 2147483648 }
  0x53   : > { %v158_v19 = vsel %vm155_vm0, %v157_v17, 0.0 }
  0x54   : > { %159 = vst [vmem:[%s133_s21] sm:$0xff] %v158_v19 }
  0x55   : > { %344 = shalt.err (!%p341_p10)
}
  0x56   : > { %s345_s18 = scalar_lea.hbm %s172_s8, 128  ;;  %s349_s25 = scalar_lea.hbm %s567_s2, 256 }
  0x57   : > { %p346_p2 = scmp.ne.s32.totalorder %s172_s8, %s345_s18  ;;  %p350_p7 = scmp.lt.s32.totalorder %s172_s8, %s567_s2 }
  0x58   : > { %p351_p0 = scmp.lt.s32.totalorder %s349_s25, %s345_s18 }
  0x59   : > { %p347_p4 = pnand %p346_p2, %p578_p12 }
  0x5a   : > { %p352_p6 = por %p351_p0, %p350_p7 }
  0x5b   : > { %p348_p9 = pneg %p347_p4 }
  0x5d   : > { %p353_p11 = pnand %p352_p6, %p348_p9 }
  0x5f   : > { %356 = shalt.err (!%p353_p11)
}
  0x60   : > { %259 = dma.vmem_to_hbm [thread:$0]  (%p578_p12), %s525_s4, 128, %s172_s8, %s161_s9  }
  0x61 PF: > { %s186_s28 = sand.u32 1, %s383_s11   ;;  %p579_p13 = scmp.ne.s32.totalorder %s573_s23, 0 }
  0x62   : > { %p580_p1 = scmp.ge.s32.totalorder %s395_s14, 2  ;;  %s187_s29 = scalar_lea.sflag [#allocation6], %s186_s28 }
  0x64   : > { %p266_p3 = pnand %p580_p1, %p579_p13 }
  0x66   : > { %p267_p5 = pneg %p266_p3 }
  0x68   : > { %378 = dma.done.wait (%p267_p5), %s187_s29, 128  }
  0x69   : > { %380 = vsyncadd (%p267_p5), %s187_s29, 4294967168  ;;  %p16_p8 = scmp.ge.s32.totalorder %s442_s16, 4   ;;  %s581_s11 = smov %s387_s12 }
  0x6a   : > { %s582_s12 = smov %s391_s13  ;;  %s583_s13 = smov %s454_s19 }
  0x6b   : > { %s584_s14 = smov %s442_s16  ;;  %18 = sbr.rel (!%p16_p8) target bundleno = 7 (0x7), region = 69 }
  0x70   :  { %192 = vsyncpa [#allocation5], 1 }
  0x71   :  { %194 = vsyncpa [#allocation5 + $0x1], 1 }
  0x72   :  { %195 = vsyncpa [#allocation6], 1 }
  0x73   :  { %197 = vsyncpa [#allocation6 + $0x1], 1 }

</bundles_post_ra>
